<compile_context>
chip_gen: v7x
topology: tpu7x:2x2x1
jax: 0.10.0
libtpu: 0.0.40
codegen_flags: <defaults>
</compile_context>

<pallas_src>
import jax
import jax.numpy as jnp
from jax.experimental import pallas as pl
from jax.experimental.pallas import tpu as pltpu


def _shortcut_kernel(x_ref, w_ref, b_ref, o_ref):
    # x_ref: (NB, Cin, TILE)   pixel tile (lanes = pixels)
    # w_ref: (Cout, Cin)       BN-scale-folded 1x1 conv weight (single-buffered)
    # b_ref: (Cout, 1)         folded conv-bias + BN shift, f32 (single-buffered)
    # o_ref: (NB, Cout, TILE)
    w = w_ref[...]
    b = b_ref[...]
    for i in range(x_ref.shape[0]):  # NB is small & static -> unrolled MXU matmuls
        y = jnp.dot(w, x_ref[i], preferred_element_type=jnp.float32)
        o_ref[i] = (y + b).astype(o_ref.dtype)


def _round_up(x, m):
    return (x + m - 1) // m * m


def _largest_divisor_at_most(n, cap):
    cap = max(1, min(n, cap))
    for d in range(cap, 0, -1):
        if n % d == 0:
            return d
    return 1


def shortcut_conv(x_nchw, conv_w, conv_b, bn_gamma, bn_beta, bn_mean, bn_var,
                  eps=1e-5, max_tile_hw=4096, max_batch_per_step=16):
    """1x1 Conv2d(stride=1) + BatchNorm2d (eval mode). NCHW in / NCHW out."""
    N, Cin, H, W = x_nchw.shape
    Cout = conv_w.shape[0]
    HW = H * W
    x_dtype = x_nchw.dtype
    itemsize = jnp.dtype(x_dtype).itemsize

    # ---- fold BN into weight + per-channel bias (f32 math) ----
    #   y = ((w @ x + b) - mean) * gamma / sqrt(var + eps) + beta
    #     = (scale * w) @ x + (beta + (b - mean) * scale)
    inv_std = jax.lax.rsqrt(bn_var.astype(jnp.float32) + eps)
    scale = bn_gamma.astype(jnp.float32) * inv_std                       # (Cout,)
    w = conv_w.reshape(Cout, Cin).astype(jnp.float32) * scale[:, None]   # (Cout, Cin)
    # Keep w in the activation dtype (bf16 path: weight quantisation is the
    # dominant-but-tolerable error source; keep f32 if tighter accuracy needed).
    w = w.astype(x_dtype)
    bias = (bn_beta.astype(jnp.float32)
            + (conv_b.astype(jnp.float32) - bn_mean.astype(jnp.float32)) * scale)
    bias = bias.reshape(Cout, 1)

    # ---- generation-aware VMEM budget ----
    try:
        vmem_cap = int(pltpu.get_tpu_info().vmem_capacity_bytes)  # 128 MiB v5e/v6e, 64 MiB v7x
    except Exception:
        vmem_cap = 64 << 20
    budget = (vmem_cap * 3) // 4  # headroom for compiler scratch / layout padding

    # Per-step live VMEM: double-buffered x & out tiles + single-buffered w, b.
    bytes_per_pixel_per_batch = 2 * itemsize * (Cin + Cout)
    fixed_bytes = Cout * Cin * itemsize + _round_up(Cout, 8) * 128 * 4
    avail = max(budget - fixed_bytes, 128 * bytes_per_pixel_per_batch)
    max_pixels_per_step = avail // bytes_per_pixel_per_batch

    # ---- tiling: pad HW only to a 128 multiple; tile must divide hw_pad ----
    hw_pad = _round_up(HW, 128)                         # <= 127 pixels of padding
    tile_cap = max(128, min(max_tile_hw, (max_pixels_per_step // 128) * 128))
    tile = 128 * _largest_divisor_at_most(hw_pad // 128, tile_cap // 128)

    # Small feature maps: group several batches per grid step.
    if tile == hw_pad:
        nb_cap = int(min(N, max_batch_per_step, max(1, max_pixels_per_step // tile)))
        nb = _largest_divisor_at_most(N, nb_cap)
    else:
        nb = 1

    # NCHW -> (N, Cin, HW) is free (already contiguous this way).
    x = x_nchw.reshape(N, Cin, HW)
    if hw_pad != HW:
        x = jnp.pad(x, ((0, 0), (0, 0), (0, hw_pad - HW)))

    grid = (hw_pad // tile, N // nb)   # pixel-tile axis first (usually the larger one)

    vmem_used = nb * tile * bytes_per_pixel_per_batch + fixed_bytes
    vmem_limit = int(min(vmem_cap, max(vmem_used + (8 << 20), 32 << 20)))

    cost = pl.CostEstimate(
        flops=2 * N * hw_pad * Cin * Cout,
        transcendentals=0,
        bytes_accessed=(N * hw_pad * Cin * itemsize
                        + Cout * Cin * itemsize
                        + N * hw_pad * Cout * itemsize),
    )

    out = pl.pallas_call(
        _shortcut_kernel,
        out_shape=jax.ShapeDtypeStruct((N, Cout, hw_pad), x_dtype),
        grid_spec=pltpu.PrefetchScalarGridSpec(
            num_scalar_prefetch=0,
            grid=grid,
            in_specs=[
                pl.BlockSpec((nb, Cin, tile), lambda t, n: (n, 0, t)),       # x tile
                pl.BlockSpec((Cout, Cin), lambda t, n: (0, 0),               # folded weight
                             pipeline_mode=pl.Buffered(1)),
                pl.BlockSpec((Cout, 1), lambda t, n: (0, 0),                 # folded bias
                             pipeline_mode=pl.Buffered(1)),
            ],
            out_specs=pl.BlockSpec((nb, Cout, tile), lambda t, n: (n, 0, t)),
        ),
        compiler_params=pltpu.CompilerParams(
            dimension_semantics=("parallel", "parallel"),   # megacore sharding on v7x
            vmem_limit_bytes=vmem_limit),
        cost_estimate=cost,
    )(x, w, bias)

    if hw_pad != HW:
        out = out[:, :, :HW]
    return out.reshape(N, Cout, H, W)


def _reference(x, conv_w, conv_b, bn_gamma, bn_beta, bn_mean, bn_var, eps):
    Cout, Cin = conv_w.shape[0], conv_w.shape[1]
    ref = (jnp.einsum('nchw,oc->nohw', x, conv_w.reshape(Cout, Cin))
           + conv_b[None, :, None, None])
    ref = (ref - bn_mean[None, :, None, None]) / jnp.sqrt(bn_var + eps)[None, :, None, None]
    return ref * bn_gamma[None, :, None, None] + bn_beta[None, :, None, None]


if __name__ == "__main__":
    key = jax.random.PRNGKey(0)
    N, Cin, Cout, H, W = 2, 4, 8, 16, 16
    eps = 1e-5

    k_x, k_w, k_b, k_g, k_be, k_m, k_v, k_x2 = jax.random.split(key, 8)
    x = jax.random.normal(k_x, (N, Cin, H, W), dtype=jnp.float32)

    # Deterministic params (shapes per nn.Conv2d(Cin,Cout,1) + nn.BatchNorm2d(Cout)).
    conv_w = jax.random.normal(k_w, (Cout, Cin, 1, 1), dtype=jnp.float32) * 0.1
    conv_b = jax.random.normal(k_b, (Cout,), dtype=jnp.float32) * 0.1
    bn_gamma = 1.0 + 0.1 * jax.random.normal(k_g, (Cout,), dtype=jnp.float32)
    bn_beta = 0.1 * jax.random.normal(k_be, (Cout,), dtype=jnp.float32)
    bn_mean = 0.1 * jax.random.normal(k_m, (Cout,), dtype=jnp.float32)
    bn_var = jnp.abs(1.0 + 0.1 * jax.random.normal(k_v, (Cout,), dtype=jnp.float32))

    # f32 path (tight tolerance).
    ref = _reference(x, conv_w, conv_b, bn_gamma, bn_beta, bn_mean, bn_var, eps)
    out = shortcut_conv(x, conv_w, conv_b, bn_gamma, bn_beta, bn_mean, bn_var, eps=eps)
    out = jax.block_until_ready(out)
    assert out.shape == (N, Cout, H, W)
    assert jnp.max(jnp.abs(out - ref)) < 1e-4

    # bf16 path (halved HBM traffic; f32 accumulate): looser tolerance.
    out_bf16 = shortcut_conv(x.astype(jnp.bfloat16), conv_w, conv_b,
                             bn_gamma, bn_beta, bn_mean, bn_var, eps=eps)
    out_bf16 = jax.block_until_ready(out_bf16)
    assert out_bf16.dtype == jnp.bfloat16
    assert jnp.max(jnp.abs(out_bf16.astype(jnp.float32) - ref)) < 5e-2

    # Non-128-multiple spatial size: exercises the (small) pixel-padding path.
    H2, W2 = 15, 17
    x2 = jax.random.normal(k_x2, (N, Cin, H2, W2), dtype=jnp.float32)
    ref2 = _reference(x2, conv_w, conv_b, bn_gamma, bn_beta, bn_mean, bn_var, eps)
    out2 = shortcut_conv(x2, conv_w, conv_b, bn_gamma, bn_beta, bn_mean, bn_var, eps=eps)
    out2 = jax.block_until_ready(out2)
    assert out2.shape == (N, Cout, H2, W2)
    assert jnp.max(jnp.abs(out2 - ref2)) < 1e-4

    print("KERNEL_OK")
</pallas_src>

<mosaic_0001>
module attributes {stable_mosaic.version = 11 : i64} {
  func.func @_shortcut_kernel(%arg0: i32, %arg1: i32, %arg2: memref<2x4x256xf32, #tpu.memory_space<vmem>>, %arg3: memref<8x4xf32, #tpu.memory_space<vmem>>, %arg4: memref<8x1xf32, #tpu.memory_space<vmem>>, %arg5: memref<2x8x256xf32, #tpu.memory_space<vmem>>) attributes {dimension_semantics = [#tpu.dimension_semantics<parallel>, #tpu.dimension_semantics<parallel>], iteration_bounds = array<i64: 1, 1>, scalar_prefetch = 0 : i64, scratch_operands = 0 : i64, tpu.core_type = #tpu.core_type<tc>, window_params = [{transform_indices = @transform_0, window_bounds = array<i64: 2, 4, 256>}, {pipeline_mode = #tpu.pipeline_mode<synchronous>, transform_indices = @transform_1, window_bounds = array<i64: 8, 4>}, {pipeline_mode = #tpu.pipeline_mode<synchronous>, transform_indices = @transform_2, window_bounds = array<i64: 8, 1>}, {transform_indices = @transform_3, window_bounds = array<i64: 2, 8, 256>}]} {
    %c0 = arith.constant 0 : index
    %c0_0 = arith.constant 0 : index
    %0 = vector.load %arg3[%c0, %c0_0] : memref<8x4xf32, #tpu.memory_space<vmem>>, vector<8x4xf32>
    %c0_1 = arith.constant 0 : index
    %c0_2 = arith.constant 0 : index
    %1 = vector.load %arg4[%c0_1, %c0_2] : memref<8x1xf32, #tpu.memory_space<vmem>>, vector<8x1xf32>
    %c0_3 = arith.constant 0 : index
    %c0_4 = arith.constant 0 : index
    %c0_5 = arith.constant 0 : index
    %2 = vector.load %arg2[%c0_3, %c0_4, %c0_5] : memref<2x4x256xf32, #tpu.memory_space<vmem>>, vector<1x4x256xf32>
    %3 = vector.shape_cast %2 : vector<1x4x256xf32> to vector<4x256xf32>
    %cst = arith.constant dense<0.000000e+00> : vector<8x256xf32>
    %4 = tpu.matmul %0, %3, %cst {dimension_numbers = #tpu.dot_dimension_numbers<[1], [0], [0], [1], [0, 0, 1, 1], [], []>} : vector<8x4xf32>, vector<4x256xf32>, vector<8x256xf32> -> vector<8x256xf32>
    %5 = vector.broadcast %1 : vector<8x1xf32> to vector<8x256xf32>
    %6 = arith.addf %4, %5 : vector<8x256xf32>
    %c0_6 = arith.constant 0 : index
    %c0_7 = arith.constant 0 : index
    %c0_8 = arith.constant 0 : index
    %7 = vector.load %arg5[%c0_6, %c0_7, %c0_8] : memref<2x8x256xf32, #tpu.memory_space<vmem>>, vector<1x8x256xf32>
    %8 = vector.shape_cast %7 : vector<1x8x256xf32> to vector<8x256xf32>
    %9 = vector.shape_cast %6 : vector<8x256xf32> to vector<1x8x256xf32>
    tpu.vector_store %arg5[%c0_6, %c0_7, %c0_8], %9 {strides = array<i32>} : memref<2x8x256xf32, #tpu.memory_space<vmem>>, vector<1x8x256xf32>,
    %c1 = arith.constant 1 : index
    %c0_9 = arith.constant 0 : index
    %c0_10 = arith.constant 0 : index
    %10 = vector.load %arg2[%c1, %c0_9, %c0_10] : memref<2x4x256xf32, #tpu.memory_space<vmem>>, vector<1x4x256xf32>
    %11 = vector.shape_cast %10 : vector<1x4x256xf32> to vector<4x256xf32>
    %cst_11 = arith.constant dense<0.000000e+00> : vector<8x256xf32>
    %12 = tpu.matmul %0, %11, %cst_11 {dimension_numbers = #tpu.dot_dimension_numbers<[1], [0], [0], [1], [0, 0, 1, 1], [], []>} : vector<8x4xf32>, vector<4x256xf32>, vector<8x256xf32> -> vector<8x256xf32>
    %13 = vector.broadcast %1 : vector<8x1xf32> to vector<8x256xf32>
    %14 = arith.addf %12, %13 : vector<8x256xf32>
    %c1_12 = arith.constant 1 : index
    %c0_13 = arith.constant 0 : index
    %c0_14 = arith.constant 0 : index
    %15 = vector.load %arg5[%c1_12, %c0_13, %c0_14] : memref<2x8x256xf32, #tpu.memory_space<vmem>>, vector<1x8x256xf32>
    %16 = vector.shape_cast %15 : vector<1x8x256xf32> to vector<8x256xf32>
    %17 = vector.shape_cast %14 : vector<8x256xf32> to vector<1x8x256xf32>
    tpu.vector_store %arg5[%c1_12, %c0_13, %c0_14], %17 {strides = array<i32>} : memref<2x8x256xf32, #tpu.memory_space<vmem>>, vector<1x8x256xf32>,
    return
  }
  func.func @transform_0(%arg0: i32, %arg1: i32) -> (i32, i32, i32) {
    %c0_i32 = arith.constant 0 : i32
    %c0_i32_0 = arith.constant 0 : i32
    return %arg1, %c0_i32, %arg0 : i32, i32, i32
  }
  func.func @transform_1(%arg0: i32, %arg1: i32) -> (i32, i32) {
    %c0_i32 = arith.constant 0 : i32
    %c0_i32_0 = arith.constant 0 : i32
    %c0_i32_1 = arith.constant 0 : i32
    return %c0_i32, %c0_i32_0 : i32, i32
  }
  func.func @transform_2(%arg0: i32, %arg1: i32) -> (i32, i32) {
    %c0_i32 = arith.constant 0 : i32
    %c0_i32_0 = arith.constant 0 : i32
    %c0_i32_1 = arith.constant 0 : i32
    return %c0_i32, %c0_i32_0 : i32, i32
  }
  func.func @transform_3(%arg0: i32, %arg1: i32) -> (i32, i32, i32) {
    %c0_i32 = arith.constant 0 : i32
    %c0_i32_0 = arith.constant 0 : i32
    return %arg1, %c0_i32, %arg0 : i32, i32, i32
  }
}

</mosaic_0001>

<bundles_post_ra>
// kernel: tpu_custom_call.1
= control target key start
LH: loop header
LB: loop body
LE: loop exit
PB: predicated region body
PF: predicated region fallthrough
CT: control target
= control target key end

     0   :  { %vm29_vm0 = vcmask 1043456   ;;  %v244_v4 = vmov 0.0   ;;  %s297_s0 = inlined_call_operand.vmem [shape: f32[2,4,256], index: 0, kind: input, shape index: {}]   ;;  %s298_s1 = inlined_call_operand.vmem [shape: f32[8,4], index: 1, kind: input, shape index: {}]   ;;  %s299_s2 = inlined_call_operand.vmem [shape: f32[8,1], index: 2, kind: input, shape index: {}]   ;;  %s300_s3 = inlined_call_operand.hbm [shape: f32[2,8,256], index: 3, kind: output, shape index: {}]  }
   0x1   :  { %v17_v0 = vld [vmem:[%s297_s0] sm:$0xff]  ;;  %v208_v1 = vld [vmem:[%s297_s0 + $0x8] sm:$0xff]  ;;  %98 = vmatprep.mubr.f32.mxu0 %v244_v4  ;;  %179 = vmatprep.mubr.f32.mxu1 %v244_v4 }
   0x2   :  { %v24_v2 = vcombine.high %v17_v0, %v17_v0  ;;  %v110_v3 = vcombine.high %v208_v1, %v208_v1 }
   0x3   :  { %8 = vsyncpa [#allocation3], 0  ;;  %v15_v5 = vld [vmem:[%s298_s1] sm:$0xff]  ;;  %vm25_vm1 = vcmask 31744   ;;  %v245_v6 = vmov 0   ;;  %s246_s0 = smov [#allocation2]  }
   0x4   :  { %217 = vset.pattern.permute.xlu0 %v245_v6  ;;  %205 = vmatprep.subr.msk.mxu0 %vm29_vm0, %v24_v2  ;;  %v16_v7 = vld [vmem:[%s299_s2] sm:$0xff]  ;;  %s194_s1 = sshll.u32 %s246_s0, 4  ;;  %s195_s1 = int_to_ptr.vmem [resolvable:$true] %s194_s1 }
   0x5   :  { %209 = vmatprep.subr.msk.mxu1 %vm29_vm0, %v110_v3  ;;  %206 = vmatpush1.msk.msra.mxu0 %vm29_vm0, %v17_v0  ;;  %s220_s2 = scalar_lea.vmem %s195_s1, 512  ;;  %p225_p1 = scmp.lt.s32.totalorder %s195_s1, %s195_s1 }
   0x6   :  { %210 = vmatpush1.msk.msra.mxu1 %vm29_vm0, %v208_v1  ;;  %207 = vmatmul.mubr.msk.f32.vlgmr.msra.gmra.mrb[0].mxu0 %vm25_vm1, %v15_v5  ;;  %p221_p0 = scmp.ne.s32.totalorder %s195_s1, %s220_s2  ;;  %p226_p2 = scmp.lt.s32.totalorder %s220_s2, %s220_s2 }
   0x7   :  { %211 = vmatmul.mubr.msk.f32.vlgmr.msra.gmra.mrb[0].mxu1 %vm25_vm1, %v15_v5  ;;  %20 = vperm.xlu0 %217, %v16_v7  }
   0x8   :  { %p227_p3 = por %p226_p2, %p225_p1 }
   0xa   :  { %p228_p4 = pnand %p227_p3, %p221_p0 }
  0x86   :  { %v21_v8 = vpop.permute.xlu0 %20 }
  0xd9   :  { %v100_v9 = vpop.f32.mrb[0].mxu0 }
  0xda   :  { %v181_v10 = vpop.f32.mrb[0].mxu1  ;;  %v101_v11 = vadd.f32 %v100_v9, %v21_v8  ;;  %v102_v13 = vpop.f32.mrb[1].mxu0 }
  0xdb   :  { %v182_v12 = vadd.f32 %v181_v10, %v21_v8  ;;  %v183_v14 = vpop.f32.mrb[1].mxu1  ;;  %v103_v15 = vadd.f32 %v102_v13, %v21_v8 }
  0xdc   :  { %v184_v16 = vadd.f32 %v183_v14, %v21_v8  ;;  %105 = vst [vmem:[#allocation2] sm:$0xff] %v101_v11 }
  0xdd   :  { %187 = vst [vmem:[#allocation2 + $0x10] sm:$0xff] %v182_v12  ;;  %106 = vst [vmem:[#allocation2 + $0x8] sm:$0xff] %v103_v15 }
  0xde   :  { %188 = vst [vmem:[#allocation2 + $0x18] sm:$0xff] %v184_v16 }
  0xdf   :  { %231 = shalt.err (!%p228_p4)
}
  0xe0   :  { %s232_s22 = scalar_lea.hbm %s300_s3, 512 }
  0xe1   :  { %p233_p5 = scmp.ne.s32.totalorder %s300_s3, %s232_s22  ;;  %p236_p6 = scmp.lt.u32.totalorder %s232_s22, %s300_s3 }
  0xe3   :  { %p238_p7 = pnand %p236_p6, %p233_p5 }
  0xe5   :  { %241 = shalt.err (!%p238_p7)
}
  0xe6   :  { %s247_s27 = smov 256   ;;  %s248_s28 = smov 16  }
  0xe7   :  { %200 = dma.vmem_to_hbm [thread:$0]  %s195_s1, 512, %s300_s3, [#allocation3], %s247_s27, %s247_s27, %s248_s28  }
  0xe8   :  { %242 = dma.done.wait [#allocation3], 512  }
  0xe9   :  { %243 = vsyncadd [#allocation3], 4294966784 }
  0xea   :  { %204 = vsyncpa [#allocation3], 1 }

</bundles_post_ra>
